<compile_context>
chip_gen: v7x
topology: tpu7x:2x2x1
jax: 0.10.0
libtpu: 0.0.40
codegen_flags: <defaults>
</compile_context>

<pallas_src>
import jax
import jax.numpy as jnp
from jax.experimental import pallas as pl
from jax.experimental.pallas import tpu as pltpu


def spam_checker_kernel(x_ref, w1_ref, b1_ref, w2_ref, b2_ref, o_ref):
    # Layer 1 on the MXU, transposed so the batch lands on the lane axis:
    #   hT[h, t] = sum_d w1[h, d] * x[t, d]   -> (H, TB), f32 accumulation.
    h_t = jnp.einsum(
        "hd,td->ht", w1_ref[...], x_ref[...], preferred_element_type=jnp.float32
    )
    h_t = jnp.maximum(h_t + b1_ref[...], 0.0)  # bias + ReLU in f32 (VPU)

    # Layer 2 (out_features == 1): VPU multiply + sublane reduction (XLU slot).
    # Result is (1, TB): batch on lanes -> lane-dense store below.
    z = jnp.sum(h_t * w2_ref[...], axis=0, keepdims=True) + b2_ref[0]

    o_ref[...] = jax.nn.sigmoid(z).astype(o_ref.dtype)  # sigmoid on the EUP, f32


def spam_checker_forward(x, w1, b1, w2, b2, *, block_b=8192):
    """Forward pass of SpamChecker.

    x : (B, D) activations.  f32 gives exact nn.Linear semantics.  If x is already
        stored bf16 in HBM the MXU operands run bf16 (f32 accumulation), halving
        the dominant HBM stream; no wrapper-side cast of x is performed.
    w1: (H, D)   PyTorch nn.Linear weight layout, H = D // 2
    b1: (H,)
    w2: (1, H)
    b2: (1,)
    Returns (B,) f32 probabilities.
    """
    B, D = x.shape
    H = w1.shape[0]

    # MXU operands share x's dtype (w1 is tiny, so this cast is negligible).
    # Biases / w2 and all elementwise math stay f32.
    w1k = w1.astype(x.dtype)
    b1k = b1.astype(jnp.float32).reshape(H, 1)   # (H, 1): broadcasts over lanes
    w2k = w2.astype(jnp.float32).reshape(H, 1)
    b2k = b2.astype(jnp.float32).reshape(1)

    # Batch tile: largest easily-VMEM-resident tile, never larger than B.  The only
    # partial block is the ragged tail (Pallas clips its DMA and its writeback).
    tb = min(int(block_b), B)
    grid = (pl.cdiv(B, tb),)

    cost = pl.CostEstimate(
        flops=2 * B * H * D + 4 * B * H + 2 * B,
        transcendentals=B,  # one sigmoid per row
        bytes_accessed=int(
            x.size * x.dtype.itemsize
            + w1k.size * w1k.dtype.itemsize
            + (b1k.size + w2k.size + b2k.size + B) * 4
        ),
    )

    out = pl.pallas_call(
        spam_checker_kernel,
        out_shape=jax.ShapeDtypeStruct((1, B), jnp.float32),
        grid=grid,
        in_specs=[
            # x: one (tb, D) batch tile per grid step (double-buffered by Pallas).
            pl.BlockSpec((tb, D), lambda i: (i, 0)),
            # Weights / layer-1 bias: constant index map -> VMEM-resident across steps.
            pl.BlockSpec((H, D), lambda i: (0, 0)),
            pl.BlockSpec((H, 1), lambda i: (0, 0)),
            pl.BlockSpec((H, 1), lambda i: (0, 0)),
            # b2 is a single scalar: keep it in SMEM (no padded VMEM tile / extra DMA).
            pl.BlockSpec(memory_space=pltpu.MemorySpace.SMEM),
        ],
        # Lane-dense output: batch on the lane axis -> full-width stores.
        out_specs=pl.BlockSpec((1, tb), lambda i: (0, i)),
        compiler_params=pltpu.CompilerParams(
            # Batch tiles are independent -> shards the grid across v7x's two
            # TensorCores (no-op on single-TC v5e/v6e).
            dimension_semantics=("parallel",),
        ),
        cost_estimate=cost,
    )(x, w1k, b1k, w2k, b2k)

    return out[0]  # the module's squeeze(1): (1, B) -> (B,), a free reshape


def init_params(key, input_size):
    """nn.Linear-style U(-1/sqrt(fan_in), 1/sqrt(fan_in)) init in PyTorch layouts:
    w1 (H, D), b1 (H,), w2 (1, H), b2 (1,)."""
    hidden = input_size // 2
    k1, k2, k3, k4 = jax.random.split(key, 4)
    lim1 = input_size ** -0.5
    lim2 = hidden ** -0.5
    w1 = jax.random.uniform(k1, (hidden, input_size), jnp.float32, -lim1, lim1)
    b1 = jax.random.uniform(k2, (hidden,), jnp.float32, -lim1, lim1)
    w2 = jax.random.uniform(k3, (1, hidden), jnp.float32, -lim2, lim2)
    b2 = jax.random.uniform(k4, (1,), jnp.float32, -lim2, lim2)
    return w1, b1, w2, b2


def reference_forward(x, w1, b1, w2, b2):
    h = jnp.maximum(x @ w1.T + b1[None, :], 0.0)
    return jax.nn.sigmoid(h @ w2.T + b2[None, :])[:, 0]


if __name__ == "__main__":
    key = jax.random.PRNGKey(0)
    kx, kp = jax.random.split(key)

    batch = 256
    input_size = 32  # hidden = 16

    x = jax.random.normal(kx, (batch, input_size), jnp.float32)
    w1, b1, w2, b2 = init_params(kp, input_size)
    ref = reference_forward(x, w1, b1, w2, b2)

    # f32 path (exact module semantics); single full-extent tile at this small batch.
    out = jax.block_until_ready(spam_checker_forward(x, w1, b1, w2, b2))
    assert out.shape == (batch,)
    assert jnp.allclose(out, ref, atol=1e-5, rtol=1e-5)

    # Ragged batch + multi-step grid with a partial last tile (no jnp.pad, no slicing).
    out_odd = jax.block_until_ready(
        spam_checker_forward(x[:200], w1, b1, w2, b2, block_b=128)
    )
    assert out_odd.shape == (200,)
    assert jnp.allclose(out_odd, ref[:200], atol=1e-5, rtol=1e-5)

    # x already stored bf16 in HBM: bf16 MXU operands, f32 accumulate + elementwise.
    out_bf16 = jax.block_until_ready(
        spam_checker_forward(x.astype(jnp.bfloat16), w1, b1, w2, b2)
    )
    assert out_bf16.shape == (batch,)
    assert jnp.allclose(out_bf16, ref, atol=5e-2, rtol=5e-2)

    print("KERNEL_OK")
</pallas_src>

<mosaic_0001>
module attributes {stable_mosaic.version = 11 : i64} {
  func.func @spam_checker_kernel(%arg0: i32, %arg1: memref<256x32xf32, #tpu.memory_space<vmem>>, %arg2: memref<16x32xf32, #tpu.memory_space<vmem>>, %arg3: memref<16x1xf32, #tpu.memory_space<vmem>>, %arg4: memref<16x1xf32, #tpu.memory_space<vmem>>, %arg5: memref<1xf32, #tpu.memory_space<smem>>, %arg6: memref<1x256xf32, #tpu.memory_space<vmem>>) attributes {dimension_semantics = [#tpu.dimension_semantics<parallel>], iteration_bounds = array<i64: 1>, scalar_prefetch = 0 : i64, scratch_operands = 0 : i64, tpu.core_type = #tpu.core_type<tc>, window_params = [{transform_indices = @transform_0, window_bounds = array<i64: 256, 32>}, {pipeline_mode = #tpu.pipeline_mode<synchronous>, transform_indices = @transform_1, window_bounds = array<i64: 16, 32>}, {pipeline_mode = #tpu.pipeline_mode<synchronous>, transform_indices = @transform_2, window_bounds = array<i64: 16, 1>}, {pipeline_mode = #tpu.pipeline_mode<synchronous>, transform_indices = @transform_3, window_bounds = array<i64: 16, 1>}, {transform_indices = @transform_4, window_bounds = array<i64: 1>}, {transform_indices = @transform_5, window_bounds = array<i64: 1, 256>}]} {
    %c0 = arith.constant 0 : index
    %c0_0 = arith.constant 0 : index
    %0 = vector.load %arg2[%c0, %c0_0] : memref<16x32xf32, #tpu.memory_space<vmem>>, vector<16x32xf32>
    %c0_1 = arith.constant 0 : index
    %c0_2 = arith.constant 0 : index
    %1 = vector.load %arg1[%c0_1, %c0_2] : memref<256x32xf32, #tpu.memory_space<vmem>>, vector<256x32xf32>
    "tpu.trace_start"() <{level = 10 : i32, message = "hd,td->ht"}> : () -> ()
    %cst = arith.constant dense<0.000000e+00> : vector<16x256xf32>
    %2 = tpu.matmul %0, %1, %cst {dimension_numbers = #tpu.dot_dimension_numbers<[1], [1], [0], [0], [0, 0, 1, 0], [], []>} : vector<16x32xf32>, vector<256x32xf32>, vector<16x256xf32> -> vector<16x256xf32>
    "tpu.trace_stop"() : () -> ()
    %c0_3 = arith.constant 0 : index
    %c0_4 = arith.constant 0 : index
    %3 = vector.load %arg3[%c0_3, %c0_4] : memref<16x1xf32, #tpu.memory_space<vmem>>, vector<16x1xf32>
    %4 = vector.broadcast %3 : vector<16x1xf32> to vector<16x256xf32>
    %5 = arith.addf %2, %4 : vector<16x256xf32>
    %cst_5 = arith.constant 0.000000e+00 : f32
    %6 = vector.broadcast %cst_5 : f32 to vector<16x256xf32>
    %7 = arith.maximumf %5, %6 : vector<16x256xf32>
    %c0_6 = arith.constant 0 : index
    %c0_7 = arith.constant 0 : index
    %8 = vector.load %arg4[%c0_6, %c0_7] : memref<16x1xf32, #tpu.memory_space<vmem>>, vector<16x1xf32>
    %9 = vector.broadcast %8 : vector<16x1xf32> to vector<16x256xf32>
    %10 = arith.mulf %7, %9 : vector<16x256xf32>
    %cst_8 = arith.constant dense<0.000000e+00> : vector<256xf32>
    %11 = vector.multi_reduction <add>, %10, %cst_8 [0] : vector<16x256xf32> to vector<256xf32>
    %12 = vector.shape_cast %11 : vector<256xf32> to vector<1x256xf32>
    %c0_9 = arith.constant 0 : index
    %13 = memref.load %arg5[%c0_9] : memref<1xf32, #tpu.memory_space<smem>>
    %14 = vector.broadcast %13 : f32 to vector<1x256xf32>
    %15 = arith.addf %12, %14 : vector<1x256xf32>
    %16 = arith.negf %15 : vector<1x256xf32>
    %17 = math.exp %16 : vector<1x256xf32>
    %cst_10 = arith.constant 1.000000e+00 : f32
    %18 = vector.broadcast %cst_10 : f32 to vector<1x256xf32>
    %19 = arith.addf %18, %17 : vector<1x256xf32>
    %20 = arith.divf %18, %19 : vector<1x256xf32>
    %c0_11 = arith.constant 0 : index
    %c0_12 = arith.constant 0 : index
    %21 = vector.load %arg6[%c0_11, %c0_12] : memref<1x256xf32, #tpu.memory_space<vmem>>, vector<1x256xf32>
    tpu.vector_store %arg6[%c0_11, %c0_12], %20 {strides = array<i32>} : memref<1x256xf32, #tpu.memory_space<vmem>>, vector<1x256xf32>,
    return
  }
  func.func @transform_0(%arg0: i32) -> (i32, i32) {
    %c0_i32 = arith.constant 0 : i32
    %c0_i32_0 = arith.constant 0 : i32
    return %arg0, %c0_i32 : i32, i32
  }
  func.func @transform_1(%arg0: i32) -> (i32, i32) {
    %c0_i32 = arith.constant 0 : i32
    %c0_i32_0 = arith.constant 0 : i32
    %c0_i32_1 = arith.constant 0 : i32
    return %c0_i32, %c0_i32_0 : i32, i32
  }
  func.func @transform_2(%arg0: i32) -> (i32, i32) {
    %c0_i32 = arith.constant 0 : i32
    %c0_i32_0 = arith.constant 0 : i32
    %c0_i32_1 = arith.constant 0 : i32
    return %c0_i32, %c0_i32_0 : i32, i32
  }
  func.func @transform_3(%arg0: i32) -> (i32, i32) {
    %c0_i32 = arith.constant 0 : i32
    %c0_i32_0 = arith.constant 0 : i32
    %c0_i32_1 = arith.constant 0 : i32
    return %c0_i32, %c0_i32_0 : i32, i32
  }
  func.func @transform_4(%arg0: i32) -> i32 {
    %c0_i32 = arith.constant 0 : i32
    %c0_i32_0 = arith.constant 0 : i32
    return %c0_i32 : i32
  }
  func.func @transform_5(%arg0: i32) -> (i32, i32) {
    %c0_i32 = arith.constant 0 : i32
    %c0_i32_0 = arith.constant 0 : i32
    return %c0_i32, %arg0 : i32, i32
  }
}

</mosaic_0001>

<bundles_post_ra>
// kernel: tpu_custom_call.1
= control target key start
LH: loop header
LB: loop body
LE: loop exit
PB: predicated region body
PF: predicated region fallthrough
CT: control target
= control target key end

     0   :  { %vm68_vm0 = vcmask 261120   ;;  %v508_v7 = vmov 0   ;;  %s752_s0 = inlined_call_operand.vmem [shape: f32[256,32], index: 0, kind: input, shape index: {}]   ;;  %s753_s1 = inlined_call_operand.vmem [shape: f32[16,32], index: 1, kind: input, shape index: {}]   ;;  %s754_s2 = inlined_call_operand.vmem [shape: f32[16,1], index: 2, kind: input, shape index: {}]   ;;  %s755_s3 = inlined_call_operand.vmem [shape: f32[16,1], index: 3, kind: input, shape index: {}]   ;;  %s756_s4 = inlined_call_operand.<no memory space> [shape: f32[1], index: 4, kind: input, shape index: {}]   ;;  %s757_s5 = inlined_call_operand.hbm [shape: f32[1,256], index: 5, kind: output, shape index: {}]  }
   0x1   :  { %v40_v0 = vld [vmem:[%s752_s0 + $0x80] sm:$0xff]  ;;  %v41_v1 = vld [vmem:[%s752_s0 + $0x88] sm:$0xff]  ;;  %vm552_vm1 = vmpackc.low %vm68_vm0, %vm68_vm0  ;;  %474 = vset.pattern.permute.xlu0 %v508_v7  ;;  %475 = vset.pattern.permute.xlu1 %v508_v7 }
   0x2   :  { %v24_v2 = vld [vmem:[%s752_s0] sm:$0xff]  ;;  %v407_v3 = vpack.c.bf16 %v41_v1, %v40_v0  ;;  %v25_v5 = vld [vmem:[%s752_s0 + $0x8] sm:$0xff]  ;;  %v42_v6 = vld [vmem:[%s752_s0 + $0x90] sm:$0xff] }
   0x3   :  { %v410_v8 = vpack.c.bf16 %v25_v5, %v24_v2  ;;  %v43_v9 = vld [vmem:[%s752_s0 + $0x98] sm:$0xff]  ;;  %v26_v11 = vld [vmem:[%s752_s0 + $0x10] sm:$0xff]  ;;  %v44_v13 = vld [vmem:[%s752_s0 + $0xa0] sm:$0xff] }
   0x4   :  { %409 = vmatprep.subr.msk.bf16.mxu0 %vm552_vm1, %v407_v3  ;;  %455 = vmatprep.subr.msk.bf16.mxu1 %vm552_vm1, %v407_v3  ;;  %v413_v10 = vpack.c.bf16 %v43_v9, %v42_v6  ;;  %v27_v12 = vld [vmem:[%s752_s0 + $0x18] sm:$0xff]  ;;  %v45_v14 = vld [vmem:[%s752_s0 + $0xa8] sm:$0xff]  ;;  %v592_v17 = vld [vmem:[%s753_s1] sm:$0xff] }
   0x5   :  { %412 = vmatpush3.bf16.xpose.msk.msra.mxu0 %vm552_vm1, %v410_v8  ;;  %463 = vmatpush3.bf16.xpose.msk.msra.mxu1 %vm552_vm1, %v410_v8  ;;  %v416_v15 = vpack.c.bf16 %v27_v12, %v26_v11  ;;  %v419_v16 = vpack.c.bf16 %v45_v14, %v44_v13  ;;  %v597_v18 = vld [vmem:[%s753_s1 + $0x8] sm:$0xff]  ;;  %v56_v19 = vld [vmem:[%s754_s2] sm:$0xff] }
   0x6   :  { %415 = vmatprep.subr.msk.bf16.mxu0 %vm552_vm1, %v413_v10  ;;  %456 = vmatprep.subr.msk.bf16.mxu1 %vm552_vm1, %v413_v10  ;;  %v252_v20 = vld [vmem:[%s755_s3] sm:$0xff]  ;;  %v29_v22 = vld [vmem:[%s752_s0 + $0x28] sm:$0xff] }
   0x7   :  { %v28_v21 = vld [vmem:[%s752_s0 + $0x20] sm:$0xff] }
   0xd   :  { %418 = vmatpush3.bf16.xpose.msk.msra.mxu0 %vm552_vm1, %v416_v15  ;;  %464 = vmatpush3.bf16.xpose.msk.msra.mxu1 %vm552_vm1, %v416_v15 }
   0xe   :  { %421 = vmatprep.subr.msk.bf16.mxu0 %vm552_vm1, %v419_v16  ;;  %457 = vmatprep.subr.msk.bf16.mxu1 %vm552_vm1, %v419_v16 }
   0xf   :  { %11 = vsyncpa [#allocation4], 0  ;;  %v46_v23 = vld [vmem:[%s752_s0 + $0xb0] sm:$0xff]  ;;  %v47_v24 = vld [vmem:[%s752_s0 + $0xb8] sm:$0xff]  ;;  %403 = vmatprep.mubr.msk.f32.mxu0 %vm68_vm0, %v592_v17  ;;  %405 = vmatprep.mubr.msk.f32.mxu1 %vm68_vm0, %v597_v18  ;;  %v422_v25 = vpack.c.bf16 %v29_v22, %v28_v21 }
  0x10   :  { %60 = vperm.xlu0 %474, %v56_v19   ;;  %256 = vperm.xlu1 %475, %v252_v20   ;;  %v57_v26 = vld [vmem:[%s754_s2 + $0x8] sm:$0xff]  ;;  %v425_v28 = vpack.c.bf16 %v47_v24, %v46_v23  ;;  %v30_v29 = vld [vmem:[%s752_s0 + $0x30] sm:$0xff]  ;;  %v31_v30 = vld [vmem:[%s752_s0 + $0x38] sm:$0xff]  ;;  %v283_v23 = vstv %s756_s4  ;;  %s510_s4 = smov [#allocation3]  }
  0x11   :  { %v253_v27 = vld [vmem:[%s755_s3 + $0x8] sm:$0xff]  ;;  %v48_v31 = vld [vmem:[%s752_s0 + $0xc0] sm:$0xff]  ;;  %v428_v33 = vpack.c.bf16 %v31_v30, %v30_v29  ;;  %v50_v37 = vld [vmem:[%s752_s0 + $0xd0] sm:$0xff]  ;;  %s327_s14 = sshll.u32 %s510_s4, 4  ;;  %s328_s14 = int_to_ptr.vmem [resolvable:$true] %s327_s14 }
  0x12   :  { %v49_v32 = vld [vmem:[%s752_s0 + $0xc8] sm:$0xff]  ;;  %v32_v35 = vld [vmem:[%s752_s0 + $0x40] sm:$0xff]  ;;  %v51_v38 = vld [vmem:[%s752_s0 + $0xd8] sm:$0xff]  ;;  %s484_s15 = scalar_lea.vmem %s328_s14, 32  ;;  %p489_p1 = scmp.lt.s32.totalorder %s328_s14, %s328_s14 }
  0x13   :  { %v431_v34 = vpack.c.bf16 %v49_v32, %v48_v31  ;;  %v33_v36 = vld [vmem:[%s752_s0 + $0x48] sm:$0xff]  ;;  %v437_v40 = vpack.c.bf16 %v51_v38, %v50_v37  ;;  %v34_v41 = vld [vmem:[%s752_s0 + $0x50] sm:$0xff]  ;;  %v35_v42 = vld [vmem:[%s752_s0 + $0x58] sm:$0xff]  ;;  %v304_v37 = vlaneseq  ;;  %p485_p0 = scmp.ne.s32.totalorder %s328_s14, %s484_s15  ;;  %p490_p2 = scmp.lt.s32.totalorder %s484_s15, %s484_s15 }
  0x14   :  { %65 = vperm.xlu0 %474, %v57_v26   ;;  %261 = vperm.xlu1 %475, %v253_v27   ;;  %v434_v39 = vpack.c.bf16 %v33_v36, %v32_v35  ;;  %v52_v43 = vld [vmem:[%s752_s0 + $0xe0] sm:$0xff]  ;;  %v53_v44 = vld [vmem:[%s752_s0 + $0xe8] sm:$0xff]  ;;  %v440_v45 = vpack.c.bf16 %v35_v42, %v34_v41  ;;  %v54_v49 = vld [vmem:[%s752_s0 + $0xf0] sm:$0xff]  ;;  %v509_v35 = vmov 1966171168  }
  0x15   :  { %424 = vmatpush3.bf16.xpose.msk.msra.mxu0 %vm552_vm1, %v422_v25  ;;  %465 = vmatpush3.bf16.xpose.msk.msra.mxu1 %vm552_vm1, %v422_v25  ;;  %v443_v46 = vpack.c.bf16 %v53_v44, %v52_v43  ;;  %v36_v47 = vld [vmem:[%s752_s0 + $0x60] sm:$0xff]  ;;  %v37_v48 = vld [vmem:[%s752_s0 + $0x68] sm:$0xff]  ;;  %v55_v50 = vld [vmem:[%s752_s0 + $0xf8] sm:$0xff]  ;;  %v302_v36 = vunpack.c.l.s4 %v509_v35  ;;  %vm318_vm2 = vcmp.lt.s32.totalorder %v304_v37, 256  ;;  %p491_p3 = por %p490_p2, %p489_p1 }
  0x16   :  { %427 = vmatprep.subr.msk.bf16.mxu0 %vm552_vm1, %v425_v28  ;;  %458 = vmatprep.subr.msk.bf16.mxu1 %vm552_vm1, %v425_v28  ;;  %v446_v51 = vpack.c.bf16 %v37_v48, %v36_v47  ;;  %v449_v52 = vpack.c.bf16 %v55_v50, %v54_v49  ;;  %v38_v53 = vld [vmem:[%s752_s0 + $0x70] sm:$0xff]  ;;  %v39_v54 = vld [vmem:[%s752_s0 + $0x78] sm:$0xff] }
  0x17   :  { %v452_v55 = vpack.c.bf16 %v39_v54, %v38_v53  ;;  %v303_v38 = vunpack.c.0.s8 %v302_v36  ;;  %p492_p4 = pnand %p491_p3, %p485_p0 }
  0x1d   :  { %430 = vmatpush3.bf16.xpose.msk.msra.mxu0 %vm552_vm1, %v428_v33  ;;  %466 = vmatpush3.bf16.xpose.msk.msra.mxu1 %vm552_vm1, %v428_v33 }
  0x1e   :  { %433 = vmatprep.subr.msk.bf16.mxu0 %vm552_vm1, %v431_v34  ;;  %459 = vmatprep.subr.msk.bf16.mxu1 %vm552_vm1, %v431_v34 }
  0x25   :  { %436 = vmatpush3.bf16.xpose.msk.msra.mxu0 %vm552_vm1, %v434_v39  ;;  %467 = vmatpush3.bf16.xpose.msk.msra.mxu1 %vm552_vm1, %v434_v39  ;;  %v305_v39 = vshrl.u32 %v304_v37, 7 }
  0x26   :  { %439 = vmatprep.subr.msk.bf16.mxu0 %vm552_vm1, %v437_v40  ;;  %460 = vmatprep.subr.msk.bf16.mxu1 %vm552_vm1, %v437_v40 }
  0x27   :  { %v306_v41 = vsub.s32 %v303_v38, %v305_v39 }
  0x2d   :  { %442 = vmatpush3.bf16.xpose.msk.msra.mxu0 %vm552_vm1, %v440_v45  ;;  %468 = vmatpush3.bf16.xpose.msk.msra.mxu1 %vm552_vm1, %v440_v45 }
  0x2e   :  { %445 = vmatprep.subr.msk.bf16.mxu0 %vm552_vm1, %v443_v46  ;;  %461 = vmatprep.subr.msk.bf16.mxu1 %vm552_vm1, %v443_v46 }
  0x35   :  { %448 = vmatpush3.bf16.xpose.msk.msra.mxu0 %vm552_vm1, %v446_v51  ;;  %469 = vmatpush3.bf16.xpose.msk.msra.mxu1 %vm552_vm1, %v446_v51 }
  0x36   :  { %451 = vmatprep.subr.msk.bf16.mxu0 %vm552_vm1, %v449_v52  ;;  %462 = vmatprep.subr.msk.bf16.mxu1 %vm552_vm1, %v449_v52 }
  0x3d   :  { %454 = vmatpush3.bf16.xpose.msk.msra.mxu0 %vm552_vm1, %v452_v55  ;;  %470 = vmatpush3.bf16.xpose.msk.msra.mxu1 %vm552_vm1, %v452_v55 }
  0x44   :  { %404 = vmatmul.mubr.msk.f32.vlgmr.msra.gmra.mrb[0].mxu0 %vm68_vm0, %v592_v17  ;;  %406 = vmatmul.mubr.msk.f32.vlgmr.msra.gmra.mrb[0].mxu1 %vm68_vm0, %v597_v18 }
  0x8f   :  { %v61_v56 = vpop.permute.xlu0 %60  ;;  %v257_v57 = vpop.permute.xlu1 %256 }
  0x93   :  { %v66_v58 = vpop.permute.xlu0 %65  ;;  %v262_v5 = vpop.permute.xlu1 %261 }
 0x117   :  { %v237_v59 = vpop.f32.mrb[0].mxu0  ;;  %v243_v60 = vpop.f32.mrb[0].mxu1 }
 0x118   :  { %v238_v61 = vadd.f32 %v237_v59, %v61_v56  ;;  %v244_v62 = vadd.f32 %v243_v60, %v66_v58  ;;  %v239_v63 = vpop.f32.mrb[1].mxu0  ;;  %v245_v0 = vpop.f32.mrb[1].mxu1 }
 0x119   :  { %v240_v1 = vadd.f32 %v239_v63, %v61_v56  ;;  %v246_v2 = vadd.f32 %v245_v0, %v66_v58 }
 0x11a   :  { %v248_v3 = vmax.f32 %v238_v61, 0.0  ;;  %v250_v4 = vmax.f32 %v244_v62, 0.0 }
 0x11b   :  { %v249_v6 = vmax.f32 %v240_v1, 0.0  ;;  %v251_v7 = vmax.f32 %v246_v2, 0.0 }
 0x11c   :  { %v264_v8 = vmul.f32 %v257_v57, %v248_v3  ;;  %v266_v9 = vmul.f32 %v262_v5, %v250_v4 }
 0x11d   :  { %v265_v10 = vmul.f32 %v257_v57, %v249_v6  ;;  %v267_v11 = vmul.f32 %v262_v5, %v251_v7 }
 0x11e   :  { %v268_v12 = vadd.f32 %v266_v9, %v264_v8 }
 0x11f   :  { %v275_v13 = vadd.f32 %v267_v11, %v265_v10 }
 0x120   :  { %v269_v14 = vrot.slane %v268_v12, 4 }
 0x121   :  { %v276_v15 = vrot.slane %v275_v13, 4 }
 0x122   :  { %v270_v16 = vadd.f32 %v269_v14, %v268_v12 }
 0x123   :  { %v277_v17 = vadd.f32 %v276_v15, %v275_v13 }
 0x124   :  { %v271_v18 = vrot.slane %v270_v16, 2 }
 0x125   :  { %v278_v19 = vrot.slane %v277_v17, 2 }
 0x126   :  { %v272_v20 = vadd.f32 %v271_v18, %v270_v16 }
 0x127   :  { %v279_v21 = vadd.f32 %v278_v19, %v277_v17 }
 0x128   :  { %v273_v22 = vrot.slane %v272_v20, 1 }
 0x129   :  { %v280_v24 = vrot.slane %v279_v21, 1 }
 0x12a   :  { %v274_v25 = vadd.f32 %v273_v22, %v272_v20 }
 0x12b   :  { %v281_v26 = vadd.f32 %v280_v24, %v279_v21 }
 0x12c   :  { %v284_v27 = vadd.f32 %v283_v23, %v274_v25 }
 0x12d   :  { %v285_v28 = vadd.f32 %v283_v23, %v281_v26 }
 0x12e   :  { %v369_v29 = vmul.f32 -1.442695, %v284_v27 }
 0x12f   :  { %v370_v30 = vmul.f32 -1.442695, %v285_v28 }
 0x130   :  { %476 = vpow2.f32 %v369_v29 }
 0x131   :  { %478 = vpow2.f32 %v370_v30 }
 0x13a   :  { %v477_v31 = vpop.eup %476 }
 0x13b   :  { %v479_v32 = vpop.eup %478  ;;  %v292_v33 = vadd.f32 1.0, %v477_v31 }
 0x13c   :  { %v293_v34 = vadd.f32 1.0, %v479_v32 }
 0x13d   :  { %480 = vrcp.f32 %v292_v33 }
 0x13e   :  { %482 = vrcp.f32 %v293_v34 }
 0x147   :  { %v481_v40 = vpop.eup %480 }
 0x148   :  { %v483_v42 = vpop.eup %482 }
 0x149   :  { %v300_v43 = vcombine.low %v481_v40, %v483_v42 }
 0x14b   :  { %v307_v44 = vrot.slane %v300_v43, %v306_v41 }
 0x14d   :  { %v314_v45 = vrot.slane %v307_v44, %v306_v41 }
 0x14f   :  { %320 = vst.msk [vmem:[#allocation3] sm:$0x3] %vm318_vm2, %v314_v45 }
 0x150   :  { %495 = shalt.err (!%p492_p4)
}
 0x151   :  { %s496_s18 = scalar_lea.hbm %s757_s5, 32 }
 0x152   :  { %p497_p5 = scmp.ne.s32.totalorder %s757_s5, %s496_s18  ;;  %p500_p6 = scmp.lt.u32.totalorder %s496_s18, %s757_s5 }
 0x154   :  { %p502_p7 = pnand %p500_p6, %p497_p5 }
 0x156   :  { %505 = shalt.err (!%p502_p7)
}
 0x157   :  { %330 = dma.vmem_to_hbm [thread:$0]  %s328_s14, 32, %s757_s5, [#allocation4]  }
 0x158   :  { %506 = dma.done.wait [#allocation4], 32  }
 0x159   :  { %507 = vsyncadd [#allocation4], 4294967264 }
 0x15a   :  { %334 = vsyncpa [#allocation4], 1 }

</bundles_post_ra>
